<compile_context>
chip_gen: v5e
topology: v5e:2x2
jax: 0.10.0
libtpu: 0.0.40
codegen_flags: <defaults>
</compile_context>

<pallas_src>
import jax
import jax.numpy as jnp
from jax.experimental import pallas as pl
from jax.experimental.pallas import tpu as pltpu


def _round_up(x, m):
    return (x + m - 1) // m * m


def _mlp_gather_kernel(x_ref, w1_ref, b1_ref, w2_ref, b2_ref, out_ref):
    # Stage 1 (MXU): (TB, 8) bf16 @ (8, nc) bf16 -> (TB, nc) f32 accumulate.
    h = jnp.dot(x_ref[...], w1_ref[...], preferred_element_type=jnp.float32)
    # f32 bias add, kept off the MXU so b1 is not bf16-rounded (tolerance).
    h = h + b1_ref[...]
    # LeakyReLU (PyTorch default slope 0.01) as a single vmax per element.
    h = jnp.maximum(h, 0.01 * h)
    # Stage 2 (MXU, free-slot work): (TB, nc) bf16 @ (nc, 128) bf16 -> f32.
    # w2_ref holds the single gathered W2 column broadcast across all 128
    # lanes, so every output lane is identical -> keep lane 0 only.
    o = jnp.dot(h.astype(jnp.bfloat16), w2_ref[...],
                preferred_element_type=jnp.float32)
    out_ref[...] = o[:, 0:1] + b2_ref[...]


def prepare_params(w1, b1, w2, b2):
    """One-time weight layout (outside the hot path).

    w1: (in_nc, nc), b1: (nc,), w2: (nc, out_nc), b2: (out_nc,)  -- x @ W layout.
    """
    in_nc, nc = w1.shape
    k_pad = _round_up(in_nc, 8)  # tiny contraction dim padded to 8 (not 128)
    w1_p = jnp.pad(jnp.asarray(w1).astype(jnp.bfloat16),
                   ((0, k_pad - in_nc), (0, 0)))           # (k_pad, nc) bf16
    b1_p = jnp.asarray(b1, jnp.float32).reshape(1, nc)     # (1, nc)     f32
    w2_p = jnp.asarray(w2).astype(jnp.bfloat16)            # (nc, out_nc) bf16, column-gatherable
    b2_p = jnp.asarray(b2, jnp.float32)                    # (out_nc,)   f32
    return {"w1": w1_p, "b1": b1_p, "w2": w2_p, "b2": b2_p}


def _pick_tb(B, nc):
    """Batch tile: big enough to amortize ~0.35 us/grid-step overhead, >= 2
    tiles when the batch allows (v7x megacore), and VMEM-safe everywhere."""
    if B <= 8:
        return _round_up(max(B, 1), 8)
    align = 256 if B >= 512 else 8            # full MXU M-tiles for large batches
    tb = min(1024, _round_up(pl.cdiv(B, 2), align))
    # VMEM guard: f32 h + bf16 h copy + (TB, 128) stage-2 result per tile.
    while tb > 256 and tb * (6 * nc + 512) > 20 * 1024 * 1024:
        tb //= 2
    return tb


@jax.jit
def nonlinear_type_forward(inp, type_idx, params):
    w1 = params["w1"]      # (k_pad, nc)   bf16
    b1 = params["b1"]      # (1, nc)       f32
    w2 = params["w2"]      # (nc, out_nc)  bf16
    b2 = params["b2"]      # (out_nc,)     f32

    B, in_nc = inp.shape
    k_pad, nc = w1.shape

    TB = _pick_tb(B, nc)
    B_pad = _round_up(B, TB)

    # Single fused cast + pad of x (batch rows + 3->8 contraction, ~16 B/row).
    x_p = inp.astype(jnp.bfloat16)
    if B_pad != B or k_pad != in_nc:
        x_p = jnp.pad(x_p, ((0, B_pad - B), (0, k_pad - in_nc)))

    # Gather hoisted before the second GEMM: pass only the selected W2 column,
    # broadcast across 128 lanes so stage 2 is a tile-aligned MXU matmul.
    # TODO(synk): torch.gather raises on out-of-range type_; dynamic_slice clamps.
    t = jnp.asarray(type_idx, jnp.int32)
    w2_col = jax.lax.dynamic_slice(w2, (jnp.int32(0), t), (nc, 1))    # (nc, 1)  bf16
    w2_cols = jnp.broadcast_to(w2_col, (nc, 128))                     # (nc, 128) bf16
    b2_val = jax.lax.dynamic_slice(b2, (t,), (1,)).reshape(1, 1)      # (1, 1)   f32

    grid = (B_pad // TB,)
    grid_spec = pltpu.PrefetchScalarGridSpec(
        num_scalar_prefetch=0,
        grid=grid,
        in_specs=[
            pl.BlockSpec((TB, k_pad), lambda i: (i, 0)),   # x: streamed over batch
            pl.BlockSpec((k_pad, nc), lambda i: (0, 0)),   # W1: resident
            pl.BlockSpec((1, nc), lambda i: (0, 0)),       # b1: resident (f32)
            pl.BlockSpec((nc, 128), lambda i: (0, 0)),     # gathered W2 column (lane-bcast)
            pl.BlockSpec((1, 1), lambda i: (0, 0)),        # gathered b2 element
        ],
        out_specs=pl.BlockSpec((TB, 1), lambda i: (i, 0)),
    )

    out_padded = pl.pallas_call(
        _mlp_gather_kernel,
        out_shape=jax.ShapeDtypeStruct((B_pad, 1), jnp.float32),
        grid_spec=grid_spec,
        compiler_params=pltpu.CompilerParams(
            dimension_semantics=("parallel",),      # v7x megacore over batch tiles
            vmem_limit_bytes=32 * 1024 * 1024,      # headroom over v5e's 16 MiB default
        ),
    )(x_p, w1, b1, w2_cols, b2_val)

    return out_padded[:B, :]


def init_params(key, in_nc, nc, out_nc):
    # Deterministic init mimicking torch.nn.Linear (uniform +/- 1/sqrt(fan_in)).
    k1, k2, k3, k4 = jax.random.split(key, 4)
    lim1 = 1.0 / jnp.sqrt(in_nc)
    lim2 = 1.0 / jnp.sqrt(nc)
    w1 = jax.random.uniform(k1, (in_nc, nc), jnp.float32, -lim1, lim1)
    b1 = jax.random.uniform(k2, (nc,), jnp.float32, -lim1, lim1)
    w2 = jax.random.uniform(k3, (nc, out_nc), jnp.float32, -lim2, lim2)
    b2 = jax.random.uniform(k4, (out_nc,), jnp.float32, -lim2, lim2)
    return w1, b1, w2, b2


if __name__ == "__main__":
    # Small shapes consistent with the module (in_nc=3, nc=1600, out_nc=18),
    # scaled down: batch=2, in_nc=3, nc=256, out_nc=18.
    B, IN_NC, NC, OUT_NC = 2, 3, 256, 18
    TYPE_ = 5  # index gathered along dim 1

    key = jax.random.PRNGKey(0)
    kx, kp = jax.random.split(key)
    x = jax.random.normal(kx, (B, IN_NC), jnp.float32)
    w1, b1, w2, b2 = init_params(kp, IN_NC, NC, OUT_NC)

    params = prepare_params(w1, b1, w2, b2)     # one-time weight layout
    out = nonlinear_type_forward(x, TYPE_, params)
    out = jax.block_until_ready(out)

    # Reference 1: exact module semantics in f32.
    h_ref = x @ w1 + b1
    h_ref = jnp.where(h_ref >= 0, h_ref, 0.01 * h_ref)
    ref_f32 = (h_ref @ w2 + b2)[:, TYPE_:TYPE_ + 1]

    # Reference 2: quantization-matched (x, W1, h, W2 rounded to bf16 exactly
    # like the kernel; bias adds and accumulation in f32).
    xq = x.astype(jnp.bfloat16).astype(jnp.float32)
    w1q = w1.astype(jnp.bfloat16).astype(jnp.float32)
    h_q = xq @ w1q + b1
    h_q = jnp.maximum(h_q, 0.01 * h_q)
    h_qb = h_q.astype(jnp.bfloat16).astype(jnp.float32)
    w2q = w2.astype(jnp.bfloat16).astype(jnp.float32)
    ref_q = (h_qb @ w2q)[:, TYPE_:TYPE_ + 1] + b2[TYPE_]

    assert out.shape == (B, 1), out.shape
    assert jnp.allclose(out, ref_q, atol=2e-3, rtol=2e-3), (out, ref_q)
    # Looser tolerance vs. the pure-f32 reference accounts for the bf16 casts
    # of x/W1/h/W2 (f32 accumulation and f32 biases inside the kernel).
    assert jnp.allclose(out, ref_f32, atol=5e-2, rtol=5e-2), (out, ref_f32)
    print("KERNEL_OK")
</pallas_src>

<mosaic_0001>
module attributes {stable_mosaic.version = 11 : i64} {
  func.func @_mlp_gather_kernel(%arg0: i32, %arg1: memref<8x8xbf16, #tpu.memory_space<vmem>>, %arg2: memref<8x256xbf16, #tpu.memory_space<vmem>>, %arg3: memref<1x256xf32, #tpu.memory_space<vmem>>, %arg4: memref<256x128xbf16, #tpu.memory_space<vmem>>, %arg5: memref<1x1xf32, #tpu.memory_space<vmem>>, %arg6: memref<8x1xf32, #tpu.memory_space<vmem>>) attributes {dimension_semantics = [#tpu.dimension_semantics<parallel>], iteration_bounds = array<i64: 1>, scalar_prefetch = 0 : i64, scratch_operands = 0 : i64, tpu.core_type = #tpu.core_type<tc>, window_params = [{transform_indices = @transform_0, window_bounds = array<i64: 8, 8>}, {pipeline_mode = #tpu.pipeline_mode<synchronous>, transform_indices = @transform_1, window_bounds = array<i64: 8, 256>}, {pipeline_mode = #tpu.pipeline_mode<synchronous>, transform_indices = @transform_2, window_bounds = array<i64: 1, 256>}, {pipeline_mode = #tpu.pipeline_mode<synchronous>, transform_indices = @transform_3, window_bounds = array<i64: 256, 128>}, {pipeline_mode = #tpu.pipeline_mode<synchronous>, transform_indices = @transform_4, window_bounds = array<i64: 1, 1>}, {transform_indices = @transform_5, window_bounds = array<i64: 8, 1>}]} {
    %c0 = arith.constant 0 : index
    %c0_0 = arith.constant 0 : index
    %0 = vector.load %arg1[%c0, %c0_0] : memref<8x8xbf16, #tpu.memory_space<vmem>>, vector<8x8xbf16>
    %c0_1 = arith.constant 0 : index
    %c0_2 = arith.constant 0 : index
    %1 = vector.load %arg2[%c0_1, %c0_2] : memref<8x256xbf16, #tpu.memory_space<vmem>>, vector<8x256xbf16>
    %cst = arith.constant dense<0.000000e+00> : vector<8x256xf32>
    %2 = tpu.matmul %0, %1, %cst {dimension_numbers = #tpu.dot_dimension_numbers<[1], [0], [0], [1], [0, 0, 1, 1], [], []>} : vector<8x8xbf16>, vector<8x256xbf16>, vector<8x256xf32> -> vector<8x256xf32>
    %c0_3 = arith.constant 0 : index
    %c0_4 = arith.constant 0 : index
    %3 = vector.load %arg3[%c0_3, %c0_4] : memref<1x256xf32, #tpu.memory_space<vmem>>, vector<1x256xf32>
    %4 = vector.broadcast %3 : vector<1x256xf32> to vector<8x256xf32>
    %5 = arith.addf %2, %4 : vector<8x256xf32>
    %cst_5 = arith.constant 0.00999999977 : f32
    %6 = vector.broadcast %cst_5 : f32 to vector<8x256xf32>
    %7 = arith.mulf %6, %5 : vector<8x256xf32>
    %8 = arith.maximumf %5, %7 : vector<8x256xf32>
    %9 = arith.truncf %8 : vector<8x256xf32> to vector<8x256xbf16>
    %c0_6 = arith.constant 0 : index
    %c0_7 = arith.constant 0 : index
    %10 = vector.load %arg4[%c0_6, %c0_7] : memref<256x128xbf16, #tpu.memory_space<vmem>>, vector<256x128xbf16>
    %cst_8 = arith.constant dense<0.000000e+00> : vector<8x128xf32>
    %11 = tpu.matmul %9, %10, %cst_8 {dimension_numbers = #tpu.dot_dimension_numbers<[1], [0], [0], [1], [0, 0, 1, 1], [], []>} : vector<8x256xbf16>, vector<256x128xbf16>, vector<8x128xf32> -> vector<8x128xf32>
    %12 = vector.extract_strided_slice %11 {offsets = [0, 0], sizes = [8, 1], strides = [1, 1]} : vector<8x128xf32> to vector<8x1xf32>
    %c0_9 = arith.constant 0 : index
    %c0_10 = arith.constant 0 : index
    %13 = vector.load %arg5[%c0_9, %c0_10] : memref<1x1xf32, #tpu.memory_space<vmem>>, vector<1x1xf32>
    %14 = vector.broadcast %13 : vector<1x1xf32> to vector<8x1xf32>
    %15 = arith.addf %12, %14 : vector<8x1xf32>
    %c0_11 = arith.constant 0 : index
    %c0_12 = arith.constant 0 : index
    %16 = vector.load %arg6[%c0_11, %c0_12] : memref<8x1xf32, #tpu.memory_space<vmem>>, vector<8x1xf32>
    tpu.vector_store %arg6[%c0_11, %c0_12], %15 {strides = array<i32>} : memref<8x1xf32, #tpu.memory_space<vmem>>, vector<8x1xf32>,
    return
  }
  func.func @transform_0(%arg0: i32) -> (i32, i32) {
    %c0_i32 = arith.constant 0 : i32
    %c0_i32_0 = arith.constant 0 : i32
    return %arg0, %c0_i32 : i32, i32
  }
  func.func @transform_1(%arg0: i32) -> (i32, i32) {
    %c0_i32 = arith.constant 0 : i32
    %c0_i32_0 = arith.constant 0 : i32
    %c0_i32_1 = arith.constant 0 : i32
    return %c0_i32, %c0_i32_0 : i32, i32
  }
  func.func @transform_2(%arg0: i32) -> (i32, i32) {
    %c0_i32 = arith.constant 0 : i32
    %c0_i32_0 = arith.constant 0 : i32
    %c0_i32_1 = arith.constant 0 : i32
    return %c0_i32, %c0_i32_0 : i32, i32
  }
  func.func @transform_3(%arg0: i32) -> (i32, i32) {
    %c0_i32 = arith.constant 0 : i32
    %c0_i32_0 = arith.constant 0 : i32
    %c0_i32_1 = arith.constant 0 : i32
    return %c0_i32, %c0_i32_0 : i32, i32
  }
  func.func @transform_4(%arg0: i32) -> (i32, i32) {
    %c0_i32 = arith.constant 0 : i32
    %c0_i32_0 = arith.constant 0 : i32
    %c0_i32_1 = arith.constant 0 : i32
    return %c0_i32, %c0_i32_0 : i32, i32
  }
  func.func @transform_5(%arg0: i32) -> (i32, i32) {
    %c0_i32 = arith.constant 0 : i32
    %c0_i32_0 = arith.constant 0 : i32
    return %arg0, %c0_i32 : i32, i32
  }
}

</mosaic_0001>

<bundles_post_ra>
// kernel: nonlinear_type_forward.1
= control target key start
LH: loop header
LB: loop body
LE: loop exit
PB: predicated region body
PF: predicated region fallthrough
CT: control target
= control target key end

     0   :  { %vm40_vm0 = vcmask 1043456   ;;  %vm36_vm1 = vcmask 64512   ;;  %vm238_vm2 = vcmask 7168   ;;  %s420_s1 = inlined_call_operand.vmem [shape: bf16[8,256], index: 1, kind: input, shape index: {}]   ;;  %s421_s3 = inlined_call_operand.vmem [shape: bf16[256,128], index: 3, kind: input, shape index: {}]   ;;  %s422_s0 = inlined_call_operand.vmem [shape: bf16[8,8], index: 0, kind: input, shape index: {}]   ;;  %s423_s2 = inlined_call_operand.vmem [shape: f32[1,256], index: 2, kind: input, shape index: {}]   ;;  %s424_s4 = inlined_call_operand.<no memory space> [shape: f32[1,1], index: 4, kind: input, shape index: {}]   ;;  %s425_s5 = inlined_call_operand.vmem [shape: f32[8,1], index: 5, kind: output, shape index: {}]  }
   0x1   :  { %v24_v0 = vld [vmem:[%s420_s1] sm:$0xff]  ;;  %v317_v1 = vld [vmem:[%s421_s3 + $0x38] sm:$0xff]  ;;  %v316_v7 = vld [vmem:[%s421_s3 + $0x30] sm:$0xff]  ;;  %v10_v39 = vstv %s424_s4 }
   0x2   :  { %v32_v2 = vunpack.c.l.b16 %v24_v0  ;;  %v33_v3 = vunpack.c.h.b16 %v24_v0  ;;  %v325_v4 = vld [vmem:[%s421_s3 + $0x78] sm:$0xff]  ;;  %207 = vmatpush.bf16.msra.mxu2 %v317_v1  ;;  %v324_v8 = vld [vmem:[%s421_s3 + $0x70] sm:$0xff]  ;;  %v23_v11 = vld [vmem:[%s422_s0] sm:$0xf]  ;;  %11 = vst [vmem:[#allocation2] sm:$0x1] %v10_v39 }
   0x3   :  { %220 = vmatpush.bf16.msra.mxu3 %v325_v4  ;;  %v315_v12 = vld [vmem:[%s421_s3 + $0x28] sm:$0xff]  ;;  %v314_v14 = vld [vmem:[%s421_s3 + $0x20] sm:$0xff]  ;;  %v313_v16 = vld [vmem:[%s421_s3 + $0x18] sm:$0xff] }
   0x4   :  { %v34_v5 = vpack.c.b16 %v32_v2, %v32_v2  ;;  %v35_v6 = vpack.c.b16 %v33_v3, %v33_v3  ;;  %v323_v13 = vld [vmem:[%s421_s3 + $0x68] sm:$0xff]  ;;  %v322_v15 = vld [vmem:[%s421_s3 + $0x60] sm:$0xff]  ;;  %v321_v17 = vld [vmem:[%s421_s3 + $0x58] sm:$0xff] }
   0x5   :  { %v312_v18 = vld [vmem:[%s421_s3 + $0x10] sm:$0xff]  ;;  %v311_v20 = vld [vmem:[%s421_s3 + $0x8] sm:$0xff]  ;;  %v310_v22 = vld [vmem:[%s421_s3] sm:$0xff] }
   0x6   :  { %v42_v9 = vsel %vm40_vm0, %v34_v5, 0  ;;  %v45_v10 = vsel %vm40_vm0, %v35_v6, 0  ;;  %208 = vmatpush.bf16.msra.mxu2 %v316_v7  ;;  %v320_v19 = vld [vmem:[%s421_s3 + $0x50] sm:$0xff]  ;;  %v319_v21 = vld [vmem:[%s421_s3 + $0x48] sm:$0xff]  ;;  %v318_v23 = vld [vmem:[%s421_s3 + $0x40] sm:$0xff] }
   0x7   :  { %54 = vmatpush.bf16.msra.mxu0 %v42_v9  ;;  %67 = vmatpush.bf16.msra.mxu1 %v45_v10  ;;  %v25_v24 = vld [vmem:[%s423_s2] sm:$0x3] }
   0x8   :  { %221 = vmatpush.bf16.msra.mxu3 %v324_v8  ;;  %v27_v25 = vperm.slane %v25_v24, 0  ;;  %v28_v26 = vperm.slane %v25_v24, 1 }
   0x9   :  { %v326_v40 = vld [vmem:[#allocation2] ss:$0 sm:$0xff] }
   0xa   :  { %244 = vmatmul.msk.bf16.vlgmr.msra.gmra.mxu0 %vm36_vm1, %v23_v11  ;;  %245 = vmatmul.msk.bf16.vlgmr.msra.gmra.mxu1 %vm36_vm1, %v23_v11 }
   0xb   :  { %209 = vmatpush.bf16.msra.mxu2 %v315_v12 }
   0xc   :  { %222 = vmatpush.bf16.msra.mxu3 %v323_v13 }
   0xf   :  { %210 = vmatpush.bf16.msra.mxu2 %v314_v14 }
  0x10   :  { %223 = vmatpush.bf16.msra.mxu3 %v322_v15 }
  0x13   :  { %211 = vmatpush.bf16.msra.mxu2 %v313_v16 }
  0x14   :  { %224 = vmatpush.bf16.msra.mxu3 %v321_v17 }
  0x17   :  { %212 = vmatpush.bf16.msra.mxu2 %v312_v18 }
  0x18   :  { %225 = vmatpush.bf16.msra.mxu3 %v320_v19 }
  0x1b   :  { %213 = vmatpush.bf16.msra.mxu2 %v311_v20 }
  0x1c   :  { %226 = vmatpush.bf16.msra.mxu3 %v319_v21 }
  0x1f   :  { %214 = vmatpush.bf16.msra.mxu2 %v310_v22 }
  0x20   :  { %227 = vmatpush.bf16.msra.mxu3 %v318_v23 }
  0x87   :  { %v56_v27 = vpop.f32.mrf.mxu0  ;;  %v69_v28 = vpop.f32.mrf.mxu1 }
  0x88   :  { %v57_v29 = vadd.f32 %v56_v27, %v27_v25  ;;  %v70_v30 = vadd.f32 %v69_v28, %v28_v26 }
  0x8a   :  { %v73_v31 = vmul.f32 0.01, %v57_v29  ;;  %v74_v32 = vmul.f32 0.01, %v70_v30 }
  0x8c   :  { %v75_v33 = vmax.f32 %v57_v29, %v73_v31  ;;  %v76_v34 = vmax.f32 %v70_v30, %v74_v32 }
  0x8e   :  { %v77_v35 = vpack.c.bf16 %v75_v33, %v75_v33  ;;  %v78_v36 = vpack.c.bf16 %v76_v34, %v76_v34 }
  0x8f   :  { %v58_v37 = vpop.f32.mrf.mxu0  ;;  %v71_v38 = vpop.f32.mrf.mxu1 }
  0x90   :  { %215 = vmatmul.bf16.vlgmr.msra.gmra.mxu2 %v77_v35  ;;  %228 = vmatmul.bf16.vlgmr.msra.gmra.mxu3 %v78_v36 }
 0x113   :  { %v216_v41 = vpop.f32.mrf.mxu2  ;;  %v229_v42 = vpop.f32.mrf.mxu3 }
 0x114   :  { %v230_v43 = vadd.f32 %v229_v42, %v216_v41 }
 0x116   :  { %v237_v44 = vadd.f32 %v326_v40, %v230_v43 }
 0x118   :  { %239 = vst.msk [vmem:[%s425_s5] sm:$0xff] %vm238_vm2, %v237_v44 }
 0x11b   :  { %v218_v45 = vpop.f32.mrf.mxu2  ;;  %v231_v46 = vpop.f32.mrf.mxu3 }

</bundles_post_ra>
